<compile_context>
chip_gen: v6e
topology: v6e:2x2x1
jax: 0.10.0
libtpu: 0.0.40
codegen_flags: <defaults>
</compile_context>

<pallas_src>
import math
import functools

import jax
import jax.numpy as jnp
from jax.experimental import pallas as pl
from jax.experimental.pallas import tpu as pltpu


def _round_up(x: int, m: int) -> int:
    return (x + m - 1) // m * m


def _cdiv(a: int, b: int) -> int:
    return -(-a // b)


def _vmem_capacity_bytes() -> int:
    try:
        cap = getattr(pltpu.get_tpu_info(), "vmem_capacity_bytes", None)
        if cap:
            return int(cap)
    except Exception:
        pass
    return 64 * 1024 * 1024  # conservative fallback (v7x per-TC VMEM)


def _exp_mod_cached_kernel(t_ref, deltas_ref, x_ref, o_ref, decay_ref, *, shift):
    # t_ref:      (TL, 1)  f32
    # deltas_ref: (1, D)   f32
    # x_ref/o_ref:(TL, D)  x.dtype
    # decay_ref:  (TL, D)  x.dtype persistent scratch (reused across the inner B axis)
    @pl.when(pl.program_id(1) == 0)
    def _():
        decay = jnp.exp(-t_ref[...] * jnp.abs(deltas_ref[...]))  # f32 on EUP
        if shift != 0.0:
            decay = decay + shift
        decay_ref[...] = decay.astype(decay_ref.dtype)

    o_ref[...] = (x_ref[...] * decay_ref[...]).astype(o_ref.dtype)


def _exp_mod_inline_kernel(t_ref, deltas_ref, x_ref, o_ref, *, shift):
    decay = jnp.exp(-t_ref[...] * jnp.abs(deltas_ref[...]))      # f32 on EUP
    if shift != 0.0:
        decay = decay + shift
    o_ref[...] = (x_ref[...] * decay.astype(x_ref.dtype)).astype(o_ref.dtype)


def exponential_modulation(
    t,            # (1, L, 1)
    x,            # (B, L, D)
    deltas,       # (1, 1, D)
    *,
    modulate: bool = True,
    shift: float = 0.0,
    max_rows: int = 4096,   # row cap per L tile (also useful to force tiling in tests)
):
    if not modulate:
        return x

    B, L, D = x.shape
    assert t.shape == (1, L, 1), t.shape
    assert deltas.shape == (1, 1, D), deltas.shape

    t = t.astype(jnp.float32)
    deltas = deltas.astype(jnp.float32)
    itemsize = jnp.dtype(x.dtype).itemsize

    # ---- tile sizing: by bytes, per-generation ----
    vmem_cap = _vmem_capacity_bytes()
    target_block_bytes = max(1 << 20, min(16 << 20, vmem_cap // 16))  # 8MiB @128MiB, 4MiB @64MiB

    row_bytes = max(1, D * itemsize)
    max_tl = max(8, min(int(max_rows), (target_block_bytes // row_bytes) // 8 * 8))
    if max_tl >= L:
        tl, num_l = L, 1                      # full-L block (any L legal when == array dim)
    else:
        tl, num_l = max_tl, _cdiv(L, max_tl)  # tl multiple of 8; last tile may be ragged

    # v7x: one L tile + one batch would leave a TensorCore idle -> split L in two.
    if num_l == 1 and B == 1 and L >= 16:
        tl = _round_up(_cdiv(L, 2), 8)
        num_l = _cdiv(L, tl)

    use_cache = (B > 2) and (num_l > 1)

    # ---- VMEM budget (lane-padded footprints, double-buffered in/out) ----
    d_lanes = _round_up(D, 128)
    x_blk = _round_up(tl, 8) * d_lanes * itemsize
    t_blk = _round_up(tl, 8) * 512            # (tl,1) f32 -> tl/8 vregs of 4 KiB
    del_blk = 8 * d_lanes * 4
    scratch_bytes = x_blk if use_cache else 0
    need = 2 * (2 * x_blk + t_blk + del_blk) + scratch_bytes + (2 << 20)
    vmem_limit = int(min(max(need, 16 << 20), max(32 << 20, vmem_cap - (16 << 20))))

    in_specs = [
        # t: one (tl, 1) column per L tile, shared across batches.
        pl.BlockSpec((None, tl, 1), lambda li, b: (0, li, 0)),
        # deltas: (1, D) shared everywhere.
        pl.BlockSpec((None, 1, D), lambda li, b: (0, 0, 0)),
        # x: one (tl, D) tile per (L tile, batch) step.
        pl.BlockSpec((None, tl, D), lambda li, b: (b, li, 0)),
    ]
    out_spec = pl.BlockSpec((None, tl, D), lambda li, b: (b, li, 0))

    if use_cache:
        kernel = functools.partial(_exp_mod_cached_kernel, shift=float(shift))
        scratch_shapes = [pltpu.VMEM((tl, D), x.dtype)]
        # B must stay ordered: the decay scratch is filled at b == 0, reused for b > 0.
        semantics = ("parallel", "arbitrary")
    else:
        kernel = functools.partial(_exp_mod_inline_kernel, shift=float(shift))
        scratch_shapes = []
        semantics = ("parallel", "parallel")

    return pl.pallas_call(
        kernel,
        out_shape=jax.ShapeDtypeStruct((B, L, D), x.dtype),
        grid_spec=pltpu.PrefetchScalarGridSpec(
            num_scalar_prefetch=0,
            grid=(num_l, B),                      # B innermost
            in_specs=in_specs,
            out_specs=out_spec,
            scratch_shapes=scratch_shapes,
        ),
        compiler_params=pltpu.CompilerParams(
            dimension_semantics=semantics,
            vmem_limit_bytes=vmem_limit,
        ),
    )(t, deltas, x)


def make_deltas(d_model, fast_decay_pct=0.3, slow_decay_pct=1.5, target=0.01):
    # Matches torch.linspace(min_decay, max_decay, d_model)[None, None]
    max_decay = math.log(target) / fast_decay_pct
    min_decay = math.log(target) / slow_decay_pct
    deltas = jnp.linspace(min_decay, max_decay, d_model, dtype=jnp.float32)
    return deltas[None, None, :]  # (1, 1, D)


def _reference(t, x, deltas, shift=0.0):
    decay = jnp.exp(-t.astype(jnp.float32) * jnp.abs(deltas.astype(jnp.float32)))
    return (x.astype(jnp.float32) * (decay + shift)).astype(x.dtype)


if __name__ == "__main__":
    key = jax.random.PRNGKey(0)
    k1, k2, k3, k4, k5 = jax.random.split(key, 5)

    # Case 1: small module-like shapes, D not a multiple of 128 (masked-store path),
    #         L fits one tile, B=2 -> inline kernel.
    B, L, D = 2, 8, 32
    t = jnp.linspace(0.0, 1.0, L, dtype=jnp.float32)[None, :, None]
    x = jax.random.normal(k1, (B, L, D), dtype=jnp.float32)
    deltas = make_deltas(D)
    out = jax.block_until_ready(exponential_modulation(t, x, deltas, shift=0.0))
    ref = _reference(t, x, deltas, 0.0)
    assert out.shape == x.shape and out.dtype == x.dtype
    assert jnp.allclose(out, ref, atol=1e-6, rtol=1e-6)

    # Case 2: lane-dense D, nonzero shift -> inline kernel.
    B2, L2, D2 = 2, 16, 128
    t2 = jnp.linspace(0.0, 1.0, L2, dtype=jnp.float32)[None, :, None]
    x2 = jax.random.normal(k2, (B2, L2, D2), dtype=jnp.float32)
    d2 = make_deltas(D2)
    out2 = jax.block_until_ready(exponential_modulation(t2, x2, d2, shift=0.5))
    assert jnp.allclose(out2, _reference(t2, x2, d2, 0.5), atol=1e-6, rtol=1e-6)

    # Case 3: B>2 and multiple L tiles (forced via max_rows) with a RAGGED last tile
    #         -> cached-decay kernel path (pl.when(b==0) + VMEM scratch).
    B3, L3, D3 = 4, 20, 32
    t3 = jnp.linspace(0.0, 2.0, L3, dtype=jnp.float32)[None, :, None]
    x3 = jax.random.normal(k3, (B3, L3, D3), dtype=jnp.float32)
    d3 = make_deltas(D3)
    out3 = jax.block_until_ready(
        exponential_modulation(t3, x3, d3, shift=0.25, max_rows=8))
    assert jnp.allclose(out3, _reference(t3, x3, d3, 0.25), atol=1e-6, rtol=1e-6)

    # Case 4: bf16 input, unaligned D, ragged last L tile -> cached path with bf16
    #         decay scratch (native bf16 multiply).
    B4, L4, D4 = 3, 44, 160
    t4 = jnp.linspace(0.0, 1.0, L4, dtype=jnp.float32)[None, :, None]
    x4 = jax.random.normal(k4, (B4, L4, D4), dtype=jnp.bfloat16)
    d4 = make_deltas(D4)
    out4 = jax.block_until_ready(
        exponential_modulation(t4, x4, d4, shift=0.1, max_rows=16))
    ref4 = _reference(t4, x4, d4, 0.1)
    assert out4.dtype == jnp.bfloat16
    assert jnp.allclose(out4.astype(jnp.float32), ref4.astype(jnp.float32),
                        atol=2e-2, rtol=2e-2)

    # Case 5: B == 1 with a single natural tile -> L force-split into 2 tiles
    #         (keeps both TensorCores busy on v7x), inline kernel.
    B5, L5, D5 = 1, 32, 64
    t5 = jnp.linspace(0.0, 1.0, L5, dtype=jnp.float32)[None, :, None]
    x5 = jax.random.normal(k5, (B5, L5, D5), dtype=jnp.float32)
    d5 = make_deltas(D5)
    out5 = jax.block_until_ready(exponential_modulation(t5, x5, d5, shift=0.0))
    assert jnp.allclose(out5, _reference(t5, x5, d5, 0.0), atol=1e-6, rtol=1e-6)

    # modulate=False passthrough
    assert exponential_modulation(t, x, deltas, modulate=False) is x

    print("KERNEL_OK")
</pallas_src>

<mosaic_0001>
module attributes {stable_mosaic.version = 11 : i64} {
  func.func @_exp_mod_inline_kernel(%arg0: i32, %arg1: i32, %arg2: memref<1x8x1xf32, #tpu.memory_space<vmem>>, %arg3: memref<1x1x32xf32, #tpu.memory_space<vmem>>, %arg4: memref<1x8x32xf32, #tpu.memory_space<vmem>>, %arg5: memref<1x8x32xf32, #tpu.memory_space<vmem>>) attributes {dimension_semantics = [#tpu.dimension_semantics<parallel>, #tpu.dimension_semantics<parallel>], iteration_bounds = array<i64: 1, 2>, scalar_prefetch = 0 : i64, scratch_operands = 0 : i64, tpu.core_type = #tpu.core_type<tc>, window_params = [{transform_indices = @transform_0, window_bounds = array<i64: 1, 8, 1>}, {pipeline_mode = #tpu.pipeline_mode<synchronous>, transform_indices = @transform_1, window_bounds = array<i64: 1, 1, 32>}, {transform_indices = @transform_2, window_bounds = array<i64: 1, 8, 32>}, {transform_indices = @transform_3, window_bounds = array<i64: 1, 8, 32>}]} {
    %c0 = arith.constant 0 : index
    %c0_0 = arith.constant 0 : index
    %c0_1 = arith.constant 0 : index
    %0 = vector.load %arg2[%c0, %c0_0, %c0_1] : memref<1x8x1xf32, #tpu.memory_space<vmem>>, vector<1x8x1xf32>
    %1 = vector.shape_cast %0 : vector<1x8x1xf32> to vector<8x1xf32>
    %cst = arith.constant 0.000000e+00 : f32
    %2 = vector.broadcast %cst : f32 to vector<8x1xf32>
    %3 = arith.subf %2, %1 : vector<8x1xf32>
    %c0_2 = arith.constant 0 : index
    %c0_3 = arith.constant 0 : index
    %c0_4 = arith.constant 0 : index
    %4 = vector.load %arg3[%c0_2, %c0_3, %c0_4] : memref<1x1x32xf32, #tpu.memory_space<vmem>>, vector<1x1x32xf32>
    %5 = vector.shape_cast %4 : vector<1x1x32xf32> to vector<1x32xf32>
    %6 = math.absf %5 : vector<1x32xf32>
    %7 = vector.broadcast %3 : vector<8x1xf32> to vector<8x32xf32>
    %8 = vector.broadcast %6 : vector<1x32xf32> to vector<8x32xf32>
    %9 = arith.mulf %7, %8 : vector<8x32xf32>
    %10 = math.exp %9 : vector<8x32xf32>
    %c0_5 = arith.constant 0 : index
    %c0_6 = arith.constant 0 : index
    %c0_7 = arith.constant 0 : index
    %11 = vector.load %arg4[%c0_5, %c0_6, %c0_7] : memref<1x8x32xf32, #tpu.memory_space<vmem>>, vector<1x8x32xf32>
    %12 = vector.shape_cast %11 : vector<1x8x32xf32> to vector<8x32xf32>
    %13 = arith.mulf %12, %10 : vector<8x32xf32>
    %c0_8 = arith.constant 0 : index
    %c0_9 = arith.constant 0 : index
    %c0_10 = arith.constant 0 : index
    %14 = vector.load %arg5[%c0_8, %c0_9, %c0_10] : memref<1x8x32xf32, #tpu.memory_space<vmem>>, vector<1x8x32xf32>
    %15 = vector.shape_cast %14 : vector<1x8x32xf32> to vector<8x32xf32>
    %16 = vector.shape_cast %13 : vector<8x32xf32> to vector<1x8x32xf32>
    tpu.vector_store %arg5[%c0_8, %c0_9, %c0_10], %16 {strides = array<i32>} : memref<1x8x32xf32, #tpu.memory_space<vmem>>, vector<1x8x32xf32>,
    return
  }
  func.func @transform_0(%arg0: i32, %arg1: i32) -> (i32, i32, i32) {
    %c0_i32 = arith.constant 0 : i32
    %c0_i32_0 = arith.constant 0 : i32
    %c0_i32_1 = arith.constant 0 : i32
    return %c0_i32, %arg0, %c0_i32_0 : i32, i32, i32
  }
  func.func @transform_1(%arg0: i32, %arg1: i32) -> (i32, i32, i32) {
    %c0_i32 = arith.constant 0 : i32
    %c0_i32_0 = arith.constant 0 : i32
    %c0_i32_1 = arith.constant 0 : i32
    %c0_i32_2 = arith.constant 0 : i32
    return %c0_i32, %c0_i32_0, %c0_i32_1 : i32, i32, i32
  }
  func.func @transform_2(%arg0: i32, %arg1: i32) -> (i32, i32, i32) {
    %c0_i32 = arith.constant 0 : i32
    %c0_i32_0 = arith.constant 0 : i32
    return %arg1, %arg0, %c0_i32 : i32, i32, i32
  }
  func.func @transform_3(%arg0: i32, %arg1: i32) -> (i32, i32, i32) {
    %c0_i32 = arith.constant 0 : i32
    %c0_i32_0 = arith.constant 0 : i32
    return %arg1, %arg0, %c0_i32 : i32, i32, i32
  }
}

</mosaic_0001>

<bundles_post_ra>
// kernel: tpu_custom_call.1
= control target key start
LH: loop header
LB: loop body
LE: loop exit
PB: predicated region body
PF: predicated region fallthrough
CT: control target
= control target key end

     0   :  { %8 = vsyncpa [#allocation3], 0  ;;  %s705_s0 = inlined_call_operand.vmem [shape: f32[1,8,1], index: 0, kind: input, shape index: {}]   ;;  %s706_s1 = inlined_call_operand.vmem [shape: f32[1,1,32], index: 1, kind: input, shape index: {}]   ;;  %s707_s2 = inlined_call_operand.hbm [shape: f32[2,8,32], index: 2, kind: input, shape index: {}]   ;;  %s708_s3 = inlined_call_operand.hbm [shape: f32[2,8,32], index: 3, kind: output, shape index: {}]  }
   0x1   :  { %10 = vsyncpa [#allocation3 + $0x1], 0 }
   0x2   :  { %11 = vsyncpa [#allocation4], 0 }
   0x3   :  { %13 = vsyncpa [#allocation4 + $0x1], 0  ;;  %s565_s12 = smov 0   ;;  %s567_s13 = smov 0  }
   0x4   :  { %s569_s14 = smov 0   ;;  %s571_s15 = smov 0  }
   0x5   :  { %s573_s16 = smov 0   ;;  %s575_s17 = smov 0  }
   0x6 LB: > { %s352_s18 = sadd.s32 4294967295, %s540_s17   ;;  %s353_s19 = sadd.s32 4294967294, %s540_s17   ;;  %s540_s17 = sphi %s575_s17, %s19_s17   ;;  %s536_s16 = sphi %s573_s16, %s720_s16   ;;  %s532_s15 = sphi %s571_s15, %s719_s15   ;;  %s528_s14 = sphi %s569_s14, %s718_s14   ;;  %s524_s13 = sphi %s567_s13, %s717_s13   ;;  %s520_s12 = sphi %s565_s12, %s716_s12  }
   0x7   : > { %s28_s20 = sadd.s32 1, %s536_s16  ;;  %s87_s21 = sadd.s32 1, %s528_s14 }
   0x8   : > { %p29_p0 = scmp.ge.s32.totalorder %s28_s20, 2  ;;  %p94_p1 = scmp.ne.s32.totalorder %s528_s14, %s524_s13 }
   0x9   : > { %p95_p2 = scmp.eq.s32.totalorder %s540_s17, 0  ;;  %p100_p3 = scmp.ne.s32.totalorder %s524_s13, %s520_s12 }
   0xa   : > { %s722_s20 = smov (%p29_p0, %s28_s20), 0  ;;  %p101_p5 = scmp.eq.s32.totalorder %s352_s18, 0 }
   0xb   : > { %p606_p4 = por %p95_p2, %p94_p1  ;;  %s82_s23 = ssub.s32 %s536_s16, %s722_s20 }
   0xc   : > { %p126_p6 = scmp.eq.s32.totalorder %s352_s18, 1  ;;  %p85_p7 = scmp.eq.s32.totalorder %s82_s23, 0 }
   0xd   : > { %p612_p8 = por %p101_p5, %p100_p3  ;;  %p132_p10 = scmp.eq.s32.totalorder %s353_s19, 1 }
   0xe   : > { %p616_p9 = por %p126_p6, %p94_p1  ;;  %p378_p13 = scmp.lt.s32.totalorder %s540_s17, 2 }
   0xf   : > { %s621_s26 = scalar_select %p85_p7, %s528_s14, %s87_s21  }
  0x10   : > { %p623_p11 = por %p132_p10, %p100_p3  ;;  %s162_s28 = sand.u32 1, %s528_s14  }
  0x11   : > { %s357_s29 = sshll.u32 %s162_s28, 3  ;;  %s358_s30 = sshll.u32 %s536_s16, 7 }
  0x12   : > { %s712_s27 = scalar_select %p623_p11, 1, 0 }
  0x13   : > { %s172_s6 = scalar_lea.hbm %s707_s2, %s358_s30  ;;  %s166_s7 = scalar_lea.vmem [#allocation2], %s357_s29 }
  0x14   : > { %s174_s8 = sshll.u32 %s166_s7, 4  ;;  %p636_p0 = pnand %p378_p13, %p606_p4  ;;  %s175_s8 = int_to_ptr.vmem [resolvable:$true] %s174_s8 }
  0x15   : > { %p359_p1 = scmp.ge.s32.totalorder %s540_s17, 1  ;;  %p179_p2 = scmp.lt.s32.totalorder %s540_s17, 3 }
  0x16   : > { %s163_s10 = scalar_lea.sflag [#allocation3], %s162_s28  ;;  %p434_p3 = pneg %p636_p0 }
  0x17   : > { %s445_s11 = scalar_lea.vmem %s175_s8, 128  ;;  %s542_s18 = smov [#allocation2]  }
  0x18   : > { %p446_p5 = scmp.ne.s32.totalorder %s175_s8, %s445_s11  ;;  %s450_s19 = sshll.u32 %s542_s18, 4  ;;  %s451_s19 = int_to_ptr.vmem [resolvable:$false] %s450_s19 }
  0x19   : > { %s452_s21 = scalar_lea.vmem %s451_s19, 256  ;;  %p453_p10 = scmp.lt.s32.totalorder %s175_s8, %s451_s19 }
  0x1a   : > { %p448_p6 = pnand %p446_p5, %p434_p3  ;;  %p454_p12 = scmp.lt.s32.totalorder %s452_s21, %s445_s11 }
  0x1c   : > { %p449_p7 = pneg %p448_p6  ;;  %p455_p4 = por %p454_p12, %p453_p10 }
  0x1e   : > { %p456_p13 = pnand %p455_p4, %p449_p7 }
  0x20   : > { %459 = shalt.err (!%p456_p13)
}
  0x21   : > { %373 = dma.hbm_to_vmem [thread:$0]  (!%p636_p0), %s172_s6, 128, %s175_s8, %s163_s10  }
  0x22   : > { %p180_p11 = pnand %p359_p1, %p179_p2 }
  0x23   : > { %s651_s22 = sand.u32 (!%p180_p11), 1, %s524_s13  }
  0x24   : > { %183 = sbr.rel (%p180_p11) target bundleno = 202 (0xca), region = 32  ;;  %s360_s23 = sshll.u32 (!%p180_p11), %s651_s22, 3 }
  0x25   : > { %s186_s28 = scalar_lea.sflag (!%p180_p11), [#allocation3], %s651_s22  ;;  %s189_s29 = scalar_lea.vmem (!%p180_p11), [#allocation2], %s360_s23 }
  0x29   : > { %511 = dma.done.wait (%p612_p8), %s186_s28, 128  }
  0x2a   : > { %513 = vsyncadd (%p612_p8), %s186_s28, 4294967168  ;;  %v543_v0 = vmov 0   ;;  %v220_v1 = vld [vmem:[%s705_s0] sm:$0xff]  ;;  %v230_v3 = vlaneseq  ;;  %s363_s24 = sshll.u32 %s532_s15, 7  ;;  %s215_s7 = scalar_lea.vmem [#allocation5], %s360_s23  ;;  %vm240_vm0 = vcmask 261120  }
  0x2b   : > { %429 = vset.pattern.permute.xlu0 %v543_v0  ;;  %v221_v2 = vsub.f32 0.0, %v220_v1  ;;  %v222_v5 = vld [vmem:[%s706_s1] sm:$0x1]  ;;  %s257_s8 = sshll.u32 %s215_s7, 4  ;;  %s255_s11 = scalar_lea.hbm %s708_s3, %s363_s24  ;;  %s258_s8 = int_to_ptr.vmem [resolvable:$true] %s257_s8 }
  0x2c   : > { %v231_v4 = vshrl.u32 %v230_v3, 7  ;;  %v223_v6 = vand.u32 2147483647, %v222_v5  ;;  %v238_v12 = vld [vmem:[%s189_s29] sm:$0xff]  ;;  %s243_s18 = scalar_lea.sflag [#allocation4], %s651_s22  ;;  %s460_s19 = scalar_lea.vmem %s258_s8, 128 }
  0x2d   : > { %226 = vperm.xlu0 %429, %v221_v2   ;;  %p461_p8 = scmp.ne.s32.totalorder %s258_s8, %s460_s19  ;;  %s544_s21 = smov [#allocation5]  }
  0x2e   : > { %v232_v7 = vsub.s32 0, %v231_v4  ;;  %s464_s28 = sshll.u32 %s544_s21, 4  ;;  %s465_s28 = int_to_ptr.vmem [resolvable:$false] %s464_s28 }
  0x2f   : > { %p462_p11 = pnand %p461_p8, %p616_p9  ;;  %s466_s15 = scalar_lea.vmem %s465_s28, 256 }
  0x30   : > { %v233_v8 = vrot.slane %v223_v6, %v232_v7  ;;  %p467_p0 = scmp.lt.s32.totalorder %s258_s8, %s465_s28  ;;  %p468_p1 = scmp.lt.s32.totalorder %s466_s15, %s460_s19 }
  0x31   : > { %p463_p12 = pneg %p462_p11 }
  0x32   : > { %p469_p2 = por %p468_p1, %p467_p0 }
  0x34   : > { %p470_p3 = pnand %p469_p2, %p463_p12 }
  0xa8   : > { %v227_v9 = vpop.permute.xlu0 %226 }
  0xa9   : > { %v235_v10 = vmul.f32 %v233_v8, %v227_v9 }
  0xab   : > { %v236_v11 = vmul.f32 1.442695, %v235_v10 }
  0xad   : > { %430 = vpow2.f32 %v236_v11 }
  0xba   : > { %v431_v13 = vpop.eup %430 }
  0xbb   : > { %v239_v14 = vmul.f32 %v431_v13, %v238_v12 }
  0xbd   : > { %241 = vst.msk [vmem:[%s215_s7] sm:$0xff] %vm240_vm0, %v239_v14 }
  0xbe   : > { %473 = shalt.err (!%p470_p3)
}
  0xbf   : > { %s474_s23 = scalar_lea.hbm %s255_s11, 128  ;;  %s478_s30 = scalar_lea.hbm %s708_s3, 256 }
  0xc0   : > { %p475_p5 = scmp.ne.s32.totalorder %s255_s11, %s474_s23  ;;  %p479_p10 = scmp.lt.s32.totalorder %s255_s11, %s708_s3 }
  0xc1   : > { %p480_p4 = scmp.lt.s32.totalorder %s478_s30, %s474_s23 }
  0xc2   : > { %p476_p6 = pnand %p475_p5, %p616_p9 }
  0xc3   : > { %p481_p13 = por %p480_p4, %p479_p10 }
  0xc4   : > { %p477_p7 = pneg %p476_p6 }
  0xc6   : > { %p482_p8 = pnand %p481_p13, %p477_p7 }
  0xc8   : > { %485 = shalt.err (!%p482_p8)
}
  0xc9   : > { %368 = dma.vmem_to_hbm [thread:$0]  (%p616_p9), %s258_s8, 128, %s255_s11, %s243_s18  }
  0xca PF: > { %s269_s6 = sand.u32 1, %s520_s12   ;;  %p714_p11 = scmp.ne.s32.totalorder %s712_s27, 0 }
  0xcb   : > { %p715_p12 = scmp.ge.s32.totalorder %s540_s17, 2  ;;  %s270_s24 = scalar_lea.sflag [#allocation4], %s269_s6 }
  0xcd   : > { %p375_p0 = pnand %p715_p12, %p714_p11 }
  0xcf   : > { %p376_p1 = pneg %p375_p0 }
  0xd1   : > { %515 = dma.done.wait (%p376_p1), %s270_s24, 128  }
  0xd2   : > { %517 = vsyncadd (%p376_p1), %s270_s24, 4294967168  ;;  %s19_s17 = sadd.s32 1, %s540_s17   ;;  %s716_s12 = smov %s524_s13 }
  0xd3   : > { %p16_p2 = scmp.ge.s32.totalorder %s19_s17, 4   ;;  %s717_s13 = smov %s528_s14 }
  0xd4   : > { %s718_s14 = smov %s621_s26  ;;  %s719_s15 = smov %s536_s16 }
  0xd5   : > { %s720_s16 = smov %s722_s20  ;;  %18 = sbr.rel (!%p16_p2) target bundleno = 6 (0x6), region = 80 }
  0xda   :  { %275 = vsyncpa [#allocation3], 1 }
  0xdb   :  { %277 = vsyncpa [#allocation3 + $0x1], 1 }
  0xdc   :  { %278 = vsyncpa [#allocation4], 1 }
  0xdd   :  { %280 = vsyncpa [#allocation4 + $0x1], 1 }

</bundles_post_ra>
